<compile_context>
chip_gen: v7x
topology: tpu7x:2x2x1
jax: 0.10.0
libtpu: 0.0.40
codegen_flags: <defaults>
</compile_context>

<pallas_src>
import functools

import numpy as np
import jax
import jax.numpy as jnp
from jax import lax
from jax.experimental import pallas as pl
from jax.experimental.pallas import tpu as pltpu

EPS = 1e-5


def _make_fused_kernel(N, H, W, C_out, Hp, num_classes):
    lanes = W * C_out
    inv_count = 1.0 / float(N * H * W)

    def kernel(a_ref, m_ref, s_ref, st_ref, g_ref, b_ref, p_ref, w3_ref,
               blin_ref, y_ref, out_ref):
        # ---- conv: single MXU matmul (row-band im2col x Toeplitz-banded weight) ----
        # a_ref: [N*H, K*W_pad*C_in] f32 ;  m_ref: [K*W_pad*C_in, W*C_out] bf16
        acc = jnp.dot(a_ref[...].astype(jnp.bfloat16), m_ref[...],
                      preferred_element_type=jnp.float32)                    # [N*H, lanes]

        # ---- BatchNorm (training-mode batch stats, biased variance) ----
        # per-channel reduce/broadcast over the (w*C_out + co) lane layout via constant
        # select matrices S [lanes, C_out] and S^T [C_out, lanes].
        row_sum = jnp.sum(acc, axis=0, keepdims=True)                        # [1, lanes]
        mean_ch = jnp.dot(row_sum, s_ref[...],
                          preferred_element_type=jnp.float32) * inv_count    # [1, C_out]
        mean_lane = jnp.dot(mean_ch, st_ref[...],
                            preferred_element_type=jnp.float32)              # [1, lanes]
        centered = acc - mean_lane
        sq_sum = jnp.sum(centered * centered, axis=0, keepdims=True)         # [1, lanes]
        var_ch = jnp.dot(sq_sum, s_ref[...],
                         preferred_element_type=jnp.float32) * inv_count     # [1, C_out]
        inv_lane = jnp.dot(lax.rsqrt(var_ch + EPS), st_ref[...],
                           preferred_element_type=jnp.float32)               # [1, lanes]
        act = jax.nn.sigmoid(centered * (inv_lane * g_ref[...]) + b_ref[...])  # [N*H, lanes]

        # ---- vertical 2x avg-pool + (n,h) -> (ph,n) row reorder via constant matmul ----
        xv = jnp.dot(p_ref[...], act, preferred_element_type=jnp.float32)    # [Hp*N, lanes]

        # ---- horizontal 2x pool + linear, folded into per-ph weight W3 (bf16) ----
        logits = jnp.zeros((N, num_classes), jnp.float32)
        for ph in range(Hp):
            xs = xv[ph * N:(ph + 1) * N, :]                                  # [N, lanes]
            logits = logits + jnp.dot(xs.astype(jnp.bfloat16), w3_ref[ph],
                                      preferred_element_type=jnp.float32)
        logits = logits + blin_ref[...]                                      # [N, classes]

        # ---- log_softmax + NLL (mean over batch) ----
        m = jnp.max(logits, axis=-1, keepdims=True)
        z = logits - m
        lse = jnp.log(jnp.sum(jnp.exp(z), axis=-1, keepdims=True))
        logp = z - lse
        cls = lax.broadcasted_iota(jnp.int32, (N, num_classes), 1)
        onehot = (cls == y_ref[...]).astype(jnp.float32)                     # [N, classes]
        per_ex = -jnp.sum(logp * onehot, axis=-1, keepdims=True)             # [N, 1]
        out_ref[...] = jnp.sum(per_ex, axis=0, keepdims=True) * (1.0 / N)

    return kernel


@functools.partial(jax.jit, static_argnames=("num_classes",))
def torch_test_forward(x, y_true, w_conv, gamma, beta, w_lin_pt, b_lin, num_classes=10):
    N, C_in, H, W = x.shape
    C_out, _, K, _ = w_conv.shape
    pad = K // 2
    Hp, Wp = H // 2, W // 2
    W_pad = W + 2 * pad
    lanes = W * C_out
    band = W_pad * C_in

    # ---- data-side glue (tiny input): NCHW -> padded NHWC -> kh-band im2col rows ----
    # A[n*H + h, kh*band + w*C_in + ci] = x_padded[n, h + kh, w, ci]
    x_nhwc = jnp.transpose(x, (0, 2, 3, 1))
    xp = jnp.pad(x_nhwc, ((0, 0), (pad, pad), (pad, pad), (0, 0)))
    bands = [xp[:, kh:kh + H].reshape(N, H, band) for kh in range(K)]
    A = jnp.stack(bands, axis=2).reshape(N * H, K * band)

    # ---- parameter-side glue (weight-only, constant across steps in practice) ----
    # Toeplitz-banded conv weight:
    #   M[kh*band + w_in*C_in + ci, w_out*C_out + co] = W[co, ci, kh, w_in - w_out]
    wt = jnp.transpose(w_conv, (2, 3, 1, 0))                            # [kh, kw, ci, co]
    w_in_idx = np.arange(W_pad)[:, None]
    w_out_idx = np.arange(W)[None, :]
    kw = w_in_idx - w_out_idx                                           # [W_pad, W]
    valid = ((kw >= 0) & (kw < K)).astype(np.float32)
    kw_c = np.clip(kw, 0, K - 1)
    g = wt[:, kw_c, :, :] * jnp.asarray(valid)[None, :, :, None, None]  # [K, W_pad, W, ci, co]
    M = jnp.transpose(g, (0, 1, 3, 2, 4)).reshape(K * band, lanes).astype(jnp.bfloat16)

    # channel select / broadcast matrices for per-channel BN stats (lane = w*C_out + co)
    S_np = np.zeros((lanes, C_out), np.float32)
    S_np[np.arange(lanes), np.arange(lanes) % C_out] = 1.0
    S = jnp.asarray(S_np)
    ST = jnp.asarray(S_np.T.copy())

    gamma_lane = jnp.tile(gamma.astype(jnp.float32), W).reshape(1, lanes)
    beta_lane = jnp.tile(beta.astype(jnp.float32), W).reshape(1, lanes)

    # vertical 2x pool + (n,h) -> (ph,n) reorder (constant 0/1 matrix)
    P_np = np.zeros((Hp * N, N * H), np.float32)
    for ph in range(Hp):
        for n in range(N):
            P_np[ph * N + n, n * H + 2 * ph] = 1.0
            P_np[ph * N + n, n * H + 2 * ph + 1] = 1.0
    P = jnp.asarray(P_np)

    # horizontal 2x pool (factor 0.25 total) + linear folded into W3[ph, w*C_out+co, cls]
    wlr = w_lin_pt.reshape(num_classes, C_out, Hp, Wp)                  # PyTorch flatten order
    w3 = jnp.transpose(wlr, (2, 3, 1, 0))                               # [ph, pw, co, cls]
    w3 = jnp.repeat(w3, 2, axis=1)                                      # [ph, w,  co, cls]
    W3 = (0.25 * w3.reshape(Hp, lanes, num_classes)).astype(jnp.bfloat16)

    b2 = b_lin.reshape(1, num_classes).astype(jnp.float32)
    y_col = y_true.astype(jnp.int32).reshape(N, 1)

    kernel = _make_fused_kernel(N, H, W, C_out, Hp, num_classes)
    out = pl.pallas_call(
        kernel,
        out_shape=jax.ShapeDtypeStruct((1, 1), jnp.float32),
        grid=(1,),
        in_specs=[
            pl.BlockSpec((N * H, K * band), lambda i: (0, 0)),
            pl.BlockSpec((K * band, lanes), lambda i: (0, 0)),
            pl.BlockSpec((lanes, C_out), lambda i: (0, 0)),
            pl.BlockSpec((C_out, lanes), lambda i: (0, 0)),
            pl.BlockSpec((1, lanes), lambda i: (0, 0)),
            pl.BlockSpec((1, lanes), lambda i: (0, 0)),
            pl.BlockSpec((Hp * N, N * H), lambda i: (0, 0)),
            pl.BlockSpec((Hp, lanes, num_classes), lambda i: (0, 0, 0)),
            pl.BlockSpec((1, num_classes), lambda i: (0, 0)),
            pl.BlockSpec((N, 1), lambda i: (0, 0)),
        ],
        out_specs=pl.BlockSpec((1, 1), lambda i: (0, 0)),
        compiler_params=pltpu.CompilerParams(dimension_semantics=("arbitrary",)),
    )(A, M, S, ST, gamma_lane, beta_lane, P, W3, b2, y_col)
    return out[0, 0]


# --------------------------------------------------------------------------
# Pure-JAX reference for validation
# --------------------------------------------------------------------------
def reference_forward(x, y_true, w_conv, gamma, beta, w_lin_pt, b_lin):
    conv = lax.conv_general_dilated(
        x, w_conv, window_strides=(1, 1), padding=[(2, 2), (2, 2)],
        dimension_numbers=("NCHW", "OIHW", "NCHW"),
    )
    mean = conv.mean(axis=(0, 2, 3), keepdims=True)
    var = conv.var(axis=(0, 2, 3), keepdims=True)
    xhat = (conv - mean) / jnp.sqrt(var + EPS)
    act = jax.nn.sigmoid(xhat * gamma.reshape(1, -1, 1, 1) + beta.reshape(1, -1, 1, 1))
    N, C, H, W = act.shape
    pooled = act.reshape(N, C, H // 2, 2, W // 2, 2).mean(axis=(3, 5))
    flat = pooled.reshape(N, -1)
    logits = flat @ w_lin_pt.T + b_lin
    logp = jax.nn.log_softmax(logits, axis=-1)
    return -jnp.mean(logp[jnp.arange(N), y_true])


if __name__ == "__main__":
    # Small shapes consistent with the module: in_channels=3, input_shape=16, classes=10.
    N, C_in, HW = 2, 3, 16
    C_out, K, num_classes = 6, 5, 10
    feat = (HW // 2) ** 2 * C_out  # 384

    key = jax.random.PRNGKey(0)
    k_x, k_wc, k_g, k_b, k_wl, k_bl, k_y = jax.random.split(key, 7)

    x = jax.random.normal(k_x, (N, C_in, HW, HW), dtype=jnp.float32)
    y_true = jax.random.randint(k_y, (N,), 0, num_classes, dtype=jnp.int32)

    conv_bound = 1.0 / (C_in * K * K) ** 0.5
    w_conv = jax.random.uniform(k_wc, (C_out, C_in, K, K), jnp.float32,
                                -conv_bound, conv_bound)
    # non-trivial BN affine params to exercise the full plumbing
    gamma = jax.random.uniform(k_g, (C_out,), jnp.float32, 0.5, 1.5)
    beta = jax.random.uniform(k_b, (C_out,), jnp.float32, -0.3, 0.3)
    lin_bound = 1.0 / feat ** 0.5
    w_lin_pt = jax.random.uniform(k_wl, (num_classes, feat), jnp.float32,
                                  -lin_bound, lin_bound)
    b_lin = jax.random.uniform(k_bl, (num_classes,), jnp.float32,
                               -lin_bound, lin_bound)

    loss = torch_test_forward(x, y_true, w_conv, gamma, beta, w_lin_pt, b_lin,
                              num_classes=num_classes)
    loss = jax.block_until_ready(loss)

    ref = reference_forward(x, y_true, w_conv, gamma, beta, w_lin_pt, b_lin)
    # bf16 MXU operands in the fused kernel introduce ~1e-3-level drift vs. the f32 reference.
    assert jnp.allclose(loss, ref, atol=2e-2, rtol=2e-2), (loss, ref)

    print("KERNEL_OK")
</pallas_src>

<mosaic_0001>
module attributes {stable_mosaic.version = 11 : i64} {
  func.func @kernel(%arg0: i32, %arg1: memref<32x300xf32, #tpu.memory_space<vmem>>, %arg2: memref<300x96xbf16, #tpu.memory_space<vmem>>, %arg3: memref<96x6xf32, #tpu.memory_space<vmem>>, %arg4: memref<6x96xf32, #tpu.memory_space<vmem>>, %arg5: memref<1x96xf32, #tpu.memory_space<vmem>>, %arg6: memref<1x96xf32, #tpu.memory_space<vmem>>, %arg7: memref<16x32xf32, #tpu.memory_space<vmem>>, %arg8: memref<8x96x10xbf16, #tpu.memory_space<vmem>>, %arg9: memref<1x10xf32, #tpu.memory_space<vmem>>, %arg10: memref<2x1xi32, #tpu.memory_space<vmem>>, %arg11: memref<1x1xf32, #tpu.memory_space<vmem>>) attributes {dimension_semantics = [#tpu.dimension_semantics<arbitrary>], iteration_bounds = array<i64: 1>, scalar_prefetch = 0 : i64, scratch_operands = 0 : i64, tpu.core_type = #tpu.core_type<tc>, window_params = [{pipeline_mode = #tpu.pipeline_mode<synchronous>, transform_indices = @transform_0, window_bounds = array<i64: 32, 300>}, {pipeline_mode = #tpu.pipeline_mode<synchronous>, transform_indices = @transform_1, window_bounds = array<i64: 300, 96>}, {pipeline_mode = #tpu.pipeline_mode<synchronous>, transform_indices = @transform_2, window_bounds = array<i64: 96, 6>}, {pipeline_mode = #tpu.pipeline_mode<synchronous>, transform_indices = @transform_3, window_bounds = array<i64: 6, 96>}, {pipeline_mode = #tpu.pipeline_mode<synchronous>, transform_indices = @transform_4, window_bounds = array<i64: 1, 96>}, {pipeline_mode = #tpu.pipeline_mode<synchronous>, transform_indices = @transform_5, window_bounds = array<i64: 1, 96>}, {pipeline_mode = #tpu.pipeline_mode<synchronous>, transform_indices = @transform_6, window_bounds = array<i64: 16, 32>}, {pipeline_mode = #tpu.pipeline_mode<synchronous>, transform_indices = @transform_7, window_bounds = array<i64: 8, 96, 10>}, {pipeline_mode = #tpu.pipeline_mode<synchronous>, transform_indices = @transform_8, window_bounds = array<i64: 1, 10>}, {pipeline_mode = #tpu.pipeline_mode<synchronous>, transform_indices = @transform_9, window_bounds = array<i64: 2, 1>}, {pipeline_mode = #tpu.pipeline_mode<synchronous>, transform_indices = @transform_10, window_bounds = array<i64: 1, 1>}]} {
    %c0 = arith.constant 0 : index
    %c0_0 = arith.constant 0 : index
    %0 = vector.load %arg1[%c0, %c0_0] : memref<32x300xf32, #tpu.memory_space<vmem>>, vector<32x300xf32>
    %1 = arith.truncf %0 : vector<32x300xf32> to vector<32x300xbf16>
    %c0_1 = arith.constant 0 : index
    %c0_2 = arith.constant 0 : index
    %2 = vector.load %arg2[%c0_1, %c0_2] : memref<300x96xbf16, #tpu.memory_space<vmem>>, vector<300x96xbf16>
    %cst = arith.constant dense<0.000000e+00> : vector<32x96xf32>
    %3 = tpu.matmul %1, %2, %cst {dimension_numbers = #tpu.dot_dimension_numbers<[1], [0], [0], [1], [0, 0, 1, 1], [], []>} : vector<32x300xbf16>, vector<300x96xbf16>, vector<32x96xf32> -> vector<32x96xf32>
    %cst_3 = arith.constant dense<0.000000e+00> : vector<96xf32>
    %4 = vector.multi_reduction <add>, %3, %cst_3 [0] : vector<32x96xf32> to vector<96xf32>
    %5 = vector.shape_cast %4 : vector<96xf32> to vector<1x96xf32>
    %c0_4 = arith.constant 0 : index
    %c0_5 = arith.constant 0 : index
    %6 = vector.load %arg3[%c0_4, %c0_5] : memref<96x6xf32, #tpu.memory_space<vmem>>, vector<96x6xf32>
    %cst_6 = arith.constant dense<0.000000e+00> : vector<1x6xf32>
    %7 = tpu.matmul %5, %6, %cst_6 {dimension_numbers = #tpu.dot_dimension_numbers<[1], [0], [0], [1], [0, 0, 1, 1], [], []>} : vector<1x96xf32>, vector<96x6xf32>, vector<1x6xf32> -> vector<1x6xf32>
    %cst_7 = arith.constant 0.001953125 : f32
    %8 = vector.broadcast %cst_7 : f32 to vector<1x6xf32>
    %9 = arith.mulf %7, %8 : vector<1x6xf32>
    %c0_8 = arith.constant 0 : index
    %c0_9 = arith.constant 0 : index
    %10 = vector.load %arg4[%c0_8, %c0_9] : memref<6x96xf32, #tpu.memory_space<vmem>>, vector<6x96xf32>
    %cst_10 = arith.constant dense<0.000000e+00> : vector<1x96xf32>
    %11 = tpu.matmul %9, %10, %cst_10 {dimension_numbers = #tpu.dot_dimension_numbers<[1], [0], [0], [1], [0, 0, 1, 1], [], []>} : vector<1x6xf32>, vector<6x96xf32>, vector<1x96xf32> -> vector<1x96xf32>
    %12 = vector.broadcast %11 : vector<1x96xf32> to vector<32x96xf32>
    %13 = arith.subf %3, %12 : vector<32x96xf32>
    %14 = arith.mulf %13, %13 : vector<32x96xf32>
    %cst_11 = arith.constant dense<0.000000e+00> : vector<96xf32>
    %15 = vector.multi_reduction <add>, %14, %cst_11 [0] : vector<32x96xf32> to vector<96xf32>
    %16 = vector.shape_cast %15 : vector<96xf32> to vector<1x96xf32>
    %c0_12 = arith.constant 0 : index
    %c0_13 = arith.constant 0 : index
    %17 = vector.load %arg3[%c0_12, %c0_13] : memref<96x6xf32, #tpu.memory_space<vmem>>, vector<96x6xf32>
    %cst_14 = arith.constant dense<0.000000e+00> : vector<1x6xf32>
    %18 = tpu.matmul %16, %17, %cst_14 {dimension_numbers = #tpu.dot_dimension_numbers<[1], [0], [0], [1], [0, 0, 1, 1], [], []>} : vector<1x96xf32>, vector<96x6xf32>, vector<1x6xf32> -> vector<1x6xf32>
    %cst_15 = arith.constant 0.001953125 : f32
    %19 = vector.broadcast %cst_15 : f32 to vector<1x6xf32>
    %20 = arith.mulf %18, %19 : vector<1x6xf32>
    %cst_16 = arith.constant 9.99999974E-6 : f32
    %21 = vector.broadcast %cst_16 : f32 to vector<1x6xf32>
    %22 = arith.addf %20, %21 : vector<1x6xf32>
    %23 = math.rsqrt %22 : vector<1x6xf32>
    %c0_17 = arith.constant 0 : index
    %c0_18 = arith.constant 0 : index
    %24 = vector.load %arg4[%c0_17, %c0_18] : memref<6x96xf32, #tpu.memory_space<vmem>>, vector<6x96xf32>
    %cst_19 = arith.constant dense<0.000000e+00> : vector<1x96xf32>
    %25 = tpu.matmul %23, %24, %cst_19 {dimension_numbers = #tpu.dot_dimension_numbers<[1], [0], [0], [1], [0, 0, 1, 1], [], []>} : vector<1x6xf32>, vector<6x96xf32>, vector<1x96xf32> -> vector<1x96xf32>
    %c0_20 = arith.constant 0 : index
    %c0_21 = arith.constant 0 : index
    %26 = vector.load %arg5[%c0_20, %c0_21] : memref<1x96xf32, #tpu.memory_space<vmem>>, vector<1x96xf32>
    %27 = arith.mulf %25, %26 : vector<1x96xf32>
    %28 = vector.broadcast %27 : vector<1x96xf32> to vector<32x96xf32>
    %29 = arith.mulf %13, %28 : vector<32x96xf32>
    %c0_22 = arith.constant 0 : index
    %c0_23 = arith.constant 0 : index
    %30 = vector.load %arg6[%c0_22, %c0_23] : memref<1x96xf32, #tpu.memory_space<vmem>>, vector<1x96xf32>
    %31 = vector.broadcast %30 : vector<1x96xf32> to vector<32x96xf32>
    %32 = arith.addf %29, %31 : vector<32x96xf32>
    %33 = arith.negf %32 : vector<32x96xf32>
    %34 = math.exp %33 : vector<32x96xf32>
    %cst_24 = arith.constant 1.000000e+00 : f32
    %35 = vector.broadcast %cst_24 : f32 to vector<32x96xf32>
    %36 = arith.addf %35, %34 : vector<32x96xf32>
    %37 = arith.divf %35, %36 : vector<32x96xf32>
    %c0_25 = arith.constant 0 : index
    %c0_26 = arith.constant 0 : index
    %38 = vector.load %arg7[%c0_25, %c0_26] : memref<16x32xf32, #tpu.memory_space<vmem>>, vector<16x32xf32>
    %cst_27 = arith.constant dense<0.000000e+00> : vector<16x96xf32>
    %39 = tpu.matmul %38, %37, %cst_27 {dimension_numbers = #tpu.dot_dimension_numbers<[1], [0], [0], [1], [0, 0, 1, 1], [], []>} : vector<16x32xf32>, vector<32x96xf32>, vector<16x96xf32> -> vector<16x96xf32>
    %cst_28 = arith.constant 0.000000e+00 : f32
    %40 = vector.broadcast %cst_28 : f32 to vector<2x10xf32>
    %41 = vector.extract_strided_slice %39 {offsets = [0, 0], sizes = [2, 96], strides = [1, 1]} : vector<16x96xf32> to vector<2x96xf32>
    %42 = arith.truncf %41 : vector<2x96xf32> to vector<2x96xbf16>
    %c0_29 = arith.constant 0 : index
    %c0_30 = arith.constant 0 : index
    %c0_31 = arith.constant 0 : index
    %43 = vector.load %arg8[%c0_29, %c0_30, %c0_31] : memref<8x96x10xbf16, #tpu.memory_space<vmem>>, vector<1x96x10xbf16>
    %44 = vector.shape_cast %43 : vector<1x96x10xbf16> to vector<96x10xbf16>
    %cst_32 = arith.constant dense<0.000000e+00> : vector<2x10xf32>
    %45 = tpu.matmul %42, %44, %cst_32 {dimension_numbers = #tpu.dot_dimension_numbers<[1], [0], [0], [1], [0, 0, 1, 1], [], []>} : vector<2x96xbf16>, vector<96x10xbf16>, vector<2x10xf32> -> vector<2x10xf32>
    %46 = arith.addf %40, %45 : vector<2x10xf32>
    %47 = vector.extract_strided_slice %39 {offsets = [2, 0], sizes = [2, 96], strides = [1, 1]} : vector<16x96xf32> to vector<2x96xf32>
    %48 = arith.truncf %47 : vector<2x96xf32> to vector<2x96xbf16>
    %c1 = arith.constant 1 : index
    %c0_33 = arith.constant 0 : index
    %c0_34 = arith.constant 0 : index
    %49 = vector.load %arg8[%c1, %c0_33, %c0_34] : memref<8x96x10xbf16, #tpu.memory_space<vmem>>, vector<1x96x10xbf16>
    %50 = vector.shape_cast %49 : vector<1x96x10xbf16> to vector<96x10xbf16>
    %cst_35 = arith.constant dense<0.000000e+00> : vector<2x10xf32>
    %51 = tpu.matmul %48, %50, %cst_35 {dimension_numbers = #tpu.dot_dimension_numbers<[1], [0], [0], [1], [0, 0, 1, 1], [], []>} : vector<2x96xbf16>, vector<96x10xbf16>, vector<2x10xf32> -> vector<2x10xf32>
    %52 = arith.addf %46, %51 : vector<2x10xf32>
    %53 = vector.extract_strided_slice %39 {offsets = [4, 0], sizes = [2, 96], strides = [1, 1]} : vector<16x96xf32> to vector<2x96xf32>
    %54 = arith.truncf %53 : vector<2x96xf32> to vector<2x96xbf16>
    %c2 = arith.constant 2 : index
    %c0_36 = arith.constant 0 : index
    %c0_37 = arith.constant 0 : index
    %55 = vector.load %arg8[%c2, %c0_36, %c0_37] : memref<8x96x10xbf16, #tpu.memory_space<vmem>>, vector<1x96x10xbf16>
    %56 = vector.shape_cast %55 : vector<1x96x10xbf16> to vector<96x10xbf16>
    %cst_38 = arith.constant dense<0.000000e+00> : vector<2x10xf32>
    %57 = tpu.matmul %54, %56, %cst_38 {dimension_numbers = #tpu.dot_dimension_numbers<[1], [0], [0], [1], [0, 0, 1, 1], [], []>} : vector<2x96xbf16>, vector<96x10xbf16>, vector<2x10xf32> -> vector<2x10xf32>
    %58 = arith.addf %52, %57 : vector<2x10xf32>
    %59 = vector.extract_strided_slice %39 {offsets = [6, 0], sizes = [2, 96], strides = [1, 1]} : vector<16x96xf32> to vector<2x96xf32>
    %60 = arith.truncf %59 : vector<2x96xf32> to vector<2x96xbf16>
    %c3 = arith.constant 3 : index
    %c0_39 = arith.constant 0 : index
    %c0_40 = arith.constant 0 : index
    %61 = vector.load %arg8[%c3, %c0_39, %c0_40] : memref<8x96x10xbf16, #tpu.memory_space<vmem>>, vector<1x96x10xbf16>
    %62 = vector.shape_cast %61 : vector<1x96x10xbf16> to vector<96x10xbf16>
    %cst_41 = arith.constant dense<0.000000e+00> : vector<2x10xf32>
    %63 = tpu.matmul %60, %62, %cst_41 {dimension_numbers = #tpu.dot_dimension_numbers<[1], [0], [0], [1], [0, 0, 1, 1], [], []>} : vector<2x96xbf16>, vector<96x10xbf16>, vector<2x10xf32> -> vector<2x10xf32>
    %64 = arith.addf %58, %63 : vector<2x10xf32>
    %65 = vector.extract_strided_slice %39 {offsets = [8, 0], sizes = [2, 96], strides = [1, 1]} : vector<16x96xf32> to vector<2x96xf32>
    %66 = arith.truncf %65 : vector<2x96xf32> to vector<2x96xbf16>
    %c4 = arith.constant 4 : index
    %c0_42 = arith.constant 0 : index
    %c0_43 = arith.constant 0 : index
    %67 = vector.load %arg8[%c4, %c0_42, %c0_43] : memref<8x96x10xbf16, #tpu.memory_space<vmem>>, vector<1x96x10xbf16>
    %68 = vector.shape_cast %67 : vector<1x96x10xbf16> to vector<96x10xbf16>
    %cst_44 = arith.constant dense<0.000000e+00> : vector<2x10xf32>
    %69 = tpu.matmul %66, %68, %cst_44 {dimension_numbers = #tpu.dot_dimension_numbers<[1], [0], [0], [1], [0, 0, 1, 1], [], []>} : vector<2x96xbf16>, vector<96x10xbf16>, vector<2x10xf32> -> vector<2x10xf32>
    %70 = arith.addf %64, %69 : vector<2x10xf32>
    %71 = vector.extract_strided_slice %39 {offsets = [10, 0], sizes = [2, 96], strides = [1, 1]} : vector<16x96xf32> to vector<2x96xf32>
    %72 = arith.truncf %71 : vector<2x96xf32> to vector<2x96xbf16>
    %c5 = arith.constant 5 : index
    %c0_45 = arith.constant 0 : index
    %c0_46 = arith.constant 0 : index
    %73 = vector.load %arg8[%c5, %c0_45, %c0_46] : memref<8x96x10xbf16, #tpu.memory_space<vmem>>, vector<1x96x10xbf16>
    %74 = vector.shape_cast %73 : vector<1x96x10xbf16> to vector<96x10xbf16>
    %cst_47 = arith.constant dense<0.000000e+00> : vector<2x10xf32>
    %75 = tpu.matmul %72, %74, %cst_47 {dimension_numbers = #tpu.dot_dimension_numbers<[1], [0], [0], [1], [0, 0, 1, 1], [], []>} : vector<2x96xbf16>, vector<96x10xbf16>, vector<2x10xf32> -> vector<2x10xf32>
    %76 = arith.addf %70, %75 : vector<2x10xf32>
    %77 = vector.extract_strided_slice %39 {offsets = [12, 0], sizes = [2, 96], strides = [1, 1]} : vector<16x96xf32> to vector<2x96xf32>
    %78 = arith.truncf %77 : vector<2x96xf32> to vector<2x96xbf16>
    %c6 = arith.constant 6 : index
    %c0_48 = arith.constant 0 : index
    %c0_49 = arith.constant 0 : index
    %79 = vector.load %arg8[%c6, %c0_48, %c0_49] : memref<8x96x10xbf16, #tpu.memory_space<vmem>>, vector<1x96x10xbf16>
    %80 = vector.shape_cast %79 : vector<1x96x10xbf16> to vector<96x10xbf16>
    %cst_50 = arith.constant dense<0.000000e+00> : vector<2x10xf32>
    %81 = tpu.matmul %78, %80, %cst_50 {dimension_numbers = #tpu.dot_dimension_numbers<[1], [0], [0], [1], [0, 0, 1, 1], [], []>} : vector<2x96xbf16>, vector<96x10xbf16>, vector<2x10xf32> -> vector<2x10xf32>
    %82 = arith.addf %76, %81 : vector<2x10xf32>
    %83 = vector.extract_strided_slice %39 {offsets = [14, 0], sizes = [2, 96], strides = [1, 1]} : vector<16x96xf32> to vector<2x96xf32>
    %84 = arith.truncf %83 : vector<2x96xf32> to vector<2x96xbf16>
    %c7 = arith.constant 7 : index
    %c0_51 = arith.constant 0 : index
    %c0_52 = arith.constant 0 : index
    %85 = vector.load %arg8[%c7, %c0_51, %c0_52] : memref<8x96x10xbf16, #tpu.memory_space<vmem>>, vector<1x96x10xbf16>
    %86 = vector.shape_cast %85 : vector<1x96x10xbf16> to vector<96x10xbf16>
    %cst_53 = arith.constant dense<0.000000e+00> : vector<2x10xf32>
    %87 = tpu.matmul %84, %86, %cst_53 {dimension_numbers = #tpu.dot_dimension_numbers<[1], [0], [0], [1], [0, 0, 1, 1], [], []>} : vector<2x96xbf16>, vector<96x10xbf16>, vector<2x10xf32> -> vector<2x10xf32>
    %88 = arith.addf %82, %87 : vector<2x10xf32>
    %c0_54 = arith.constant 0 : index
    %c0_55 = arith.constant 0 : index
    %89 = vector.load %arg9[%c0_54, %c0_55] : memref<1x10xf32, #tpu.memory_space<vmem>>, vector<1x10xf32>
    %90 = vector.broadcast %89 : vector<1x10xf32> to vector<2x10xf32>
    %91 = arith.addf %88, %90 : vector<2x10xf32>
    %cst_56 = arith.constant dense<0xFF800000> : vector<2xf32>
    %92 = vector.multi_reduction <maximumf>, %91, %cst_56 [1] : vector<2x10xf32> to vector<2xf32>
    %93 = vector.shape_cast %92 : vector<2xf32> to vector<2x1xf32>
    %94 = vector.broadcast %93 : vector<2x1xf32> to vector<2x10xf32>
    %95 = arith.subf %91, %94 : vector<2x10xf32>
    %96 = math.exp %95 : vector<2x10xf32>
    %cst_57 = arith.constant dense<0.000000e+00> : vector<2xf32>
    %97 = vector.multi_reduction <add>, %96, %cst_57 [1] : vector<2x10xf32> to vector<2xf32>
    %98 = vector.shape_cast %97 : vector<2xf32> to vector<2x1xf32>
    %99 = math.log %98 : vector<2x1xf32>
    %100 = vector.broadcast %99 : vector<2x1xf32> to vector<2x10xf32>
    %101 = arith.subf %95, %100 : vector<2x10xf32>
    %102 = tpu.iota {dimensions = array<i32: 1>} : vector<2x10xi32>
    %c0_58 = arith.constant 0 : index
    %c0_59 = arith.constant 0 : index
    %103 = vector.load %arg10[%c0_58, %c0_59] : memref<2x1xi32, #tpu.memory_space<vmem>>, vector<2x1xi32>
    %104 = vector.broadcast %103 : vector<2x1xi32> to vector<2x10xi32>
    %105 = arith.cmpi eq, %102, %104 : vector<2x10xi32>
    %106 = arith.extui %105 : vector<2x10xi1> to vector<2x10xi32>
    %107 = arith.sitofp %106 : vector<2x10xi32> to vector<2x10xf32>
    %108 = arith.mulf %101, %107 : vector<2x10xf32>
    %cst_60 = arith.constant dense<0.000000e+00> : vector<2xf32>
    %109 = vector.multi_reduction <add>, %108, %cst_60 [1] : vector<2x10xf32> to vector<2xf32>
    %110 = vector.shape_cast %109 : vector<2xf32> to vector<2x1xf32>
    %cst_61 = arith.constant 0.000000e+00 : f32
    %111 = vector.broadcast %cst_61 : f32 to vector<2x1xf32>
    %112 = arith.subf %111, %110 : vector<2x1xf32>
    %cst_62 = arith.constant dense<0.000000e+00> : vector<1xf32>
    %113 = vector.multi_reduction <add>, %112, %cst_62 [0] : vector<2x1xf32> to vector<1xf32>
    %114 = vector.shape_cast %113 : vector<1xf32> to vector<1x1xf32>
    %cst_63 = arith.constant 5.000000e-01 : f32
    %115 = vector.broadcast %cst_63 : f32 to vector<1x1xf32>
    %116 = arith.mulf %114, %115 : vector<1x1xf32>
    %c0_64 = arith.constant 0 : index
    %c0_65 = arith.constant 0 : index
    %117 = vector.load %arg11[%c0_64, %c0_65] : memref<1x1xf32, #tpu.memory_space<vmem>>, vector<1x1xf32>
    tpu.vector_store %arg11[%c0_64, %c0_65], %116 {strides = array<i32>} : memref<1x1xf32, #tpu.memory_space<vmem>>, vector<1x1xf32>,
    return
  }
  func.func @transform_0(%arg0: i32) -> (i32, i32) {
    %c0_i32 = arith.constant 0 : i32
    %c0_i32_0 = arith.constant 0 : i32
    %c0_i32_1 = arith.constant 0 : i32
    return %c0_i32, %c0_i32_0 : i32, i32
  }
  func.func @transform_1(%arg0: i32) -> (i32, i32) {
    %c0_i32 = arith.constant 0 : i32
    %c0_i32_0 = arith.constant 0 : i32
    %c0_i32_1 = arith.constant 0 : i32
    return %c0_i32, %c0_i32_0 : i32, i32
  }
  func.func @transform_2(%arg0: i32) -> (i32, i32) {
    %c0_i32 = arith.constant 0 : i32
    %c0_i32_0 = arith.constant 0 : i32
    %c0_i32_1 = arith.constant 0 : i32
    return %c0_i32, %c0_i32_0 : i32, i32
  }
  func.func @transform_3(%arg0: i32) -> (i32, i32) {
    %c0_i32 = arith.constant 0 : i32
    %c0_i32_0 = arith.constant 0 : i32
    %c0_i32_1 = arith.constant 0 : i32
    return %c0_i32, %c0_i32_0 : i32, i32
  }
  func.func @transform_4(%arg0: i32) -> (i32, i32) {
    %c0_i32 = arith.constant 0 : i32
    %c0_i32_0 = arith.constant 0 : i32
    %c0_i32_1 = arith.constant 0 : i32
    return %c0_i32, %c0_i32_0 : i32, i32
  }
  func.func @transform_5(%arg0: i32) -> (i32, i32) {
    %c0_i32 = arith.constant 0 : i32
    %c0_i32_0 = arith.constant 0 : i32
    %c0_i32_1 = arith.constant 0 : i32
    return %c0_i32, %c0_i32_0 : i32, i32
  }
  func.func @transform_6(%arg0: i32) -> (i32, i32) {
    %c0_i32 = arith.constant 0 : i32
    %c0_i32_0 = arith.constant 0 : i32
    %c0_i32_1 = arith.constant 0 : i32
    return %c0_i32, %c0_i32_0 : i32, i32
  }
  func.func @transform_7(%arg0: i32) -> (i32, i32, i32) {
    %c0_i32 = arith.constant 0 : i32
    %c0_i32_0 = arith.constant 0 : i32
    %c0_i32_1 = arith.constant 0 : i32
    %c0_i32_2 = arith.constant 0 : i32
    return %c0_i32, %c0_i32_0, %c0_i32_1 : i32, i32, i32
  }
  func.func @transform_8(%arg0: i32) -> (i32, i32) {
    %c0_i32 = arith.constant 0 : i32
    %c0_i32_0 = arith.constant 0 : i32
    %c0_i32_1 = arith.constant 0 : i32
    return %c0_i32, %c0_i32_0 : i32, i32
  }
  func.func @transform_9(%arg0: i32) -> (i32, i32) {
    %c0_i32 = arith.constant 0 : i32
    %c0_i32_0 = arith.constant 0 : i32
    %c0_i32_1 = arith.constant 0 : i32
    return %c0_i32, %c0_i32_0 : i32, i32
  }
  func.func @transform_10(%arg0: i32) -> (i32, i32) {
    %c0_i32 = arith.constant 0 : i32
    %c0_i32_0 = arith.constant 0 : i32
    %c0_i32_1 = arith.constant 0 : i32
    return %c0_i32, %c0_i32_0 : i32, i32
  }
}

</mosaic_0001>

<bundles_post_ra>
// kernel: tile.13
= control target key start
LH: loop header
LB: loop body
LE: loop exit
PB: predicated region body
PF: predicated region fallthrough
CT: control target
= control target key end

     0   :  { %s28_s0 = inlined_call_operand.vmem [shape: f32[6], index: 0, kind: input, shape index: {}]   ;;  %s29_s1 = inlined_call_operand.vmem [shape: f32[16,6], index: 1, kind: output, shape index: {}]  }
   0x1   :  { %v4_v0 = vld [vmem:[%s28_s0] ss:$0 sm:$0xff] }
   0x2   :  { %5 = vst [vmem:[%s29_s1] sm:$0xff] %v4_v0  ;;  %8 = vst [vmem:[%s29_s1 + $0x8] sm:$0xff] %v4_v0 }

// kernel: tile.14
= control target key start
LH: loop header
LB: loop body
LE: loop exit
PB: predicated region body
PF: predicated region fallthrough
CT: control target
= control target key end

     0   :  { %s131_s10 = smov 90   ;;  %s132_s11 = smov 78   ;;  %vm3_vm0 = vcmask 48128   ;;  %vm9_vm1 = vcmask 786128   ;;  %vm15_vm2 = vcmask 736928   ;;  %vm21_vm3 = vcmask 687728   ;;  %s207_s0 = inlined_call_operand.vmem [shape: f32[16,6], index: 0, kind: input, shape index: {}]   ;;  %s208_s1 = inlined_call_operand.vmem [shape: f32[1,96], index: 1, kind: output, shape index: {}]  }
   0x1   :  { %v101_v0 = vld [vmem:[%s207_s0 + $0xf] sm:$0x1]   ;;  %v103_v1 = vld [vmem:[%s207_s0 + $0xd] sm:$0x1]   ;;  %v102_v2 = vld [vmem:[%s207_s0 + $0xe] sm:$0x1]  }
   0x2   :  { %7 = vrot.lane.b32.xlu0 %v101_v0, %s131_s10  ;;  %19 = vrot.lane.b32.xlu1 %v103_v1, %s132_s11  ;;  %v104_v3 = vld [vmem:[%s207_s0 + $0xc] sm:$0x1]   ;;  %s133_s16 = smov 84   ;;  %s134_s17 = smov 72   ;;  %v105_v4 = vld [vmem:[%s207_s0 + $0xb] sm:$0x1]  }
   0x3   :  { %v106_v5 = vld [vmem:[%s207_s0 + $0xa] sm:$0x1]   ;;  %v2_v6 = vld [vmem:[%s207_s0] sm:$0x1]   ;;  %s135_s24 = smov 66   ;;  %s136_s25 = smov 60  }
   0x4   :  { %4 = vst.msk [vmem:[#allocation0] sm:$0x1] %vm3_vm0, %v2_v6   ;;  %v107_v7 = vld [vmem:[%s207_s0 + $0x9] sm:$0x1]   ;;  %v108_v8 = vld [vmem:[%s207_s0 + $0x8] sm:$0x1]  }
   0x5   :  { %s137_s30 = smov 54   ;;  %s138_s2 = smov 48   ;;  %v109_v9 = vld [vmem:[%s207_s0 + $0x7] sm:$0x1]   ;;  %v110_v10 = vld [vmem:[%s207_s0 + $0x6] sm:$0x1]  }
   0x6   :  { %13 = vrot.lane.b32.xlu0 %v102_v2, %s133_s16  ;;  %25 = vrot.lane.b32.xlu1 %v104_v3, %s134_s17  ;;  %s139_s7 = smov 42   ;;  %s140_s8 = smov 36   ;;  %v111_v11 = vld [vmem:[%s207_s0 + $0x5] sm:$0x1]   ;;  %v112_v12 = vld [vmem:[%s207_s0 + $0x4] sm:$0x1]  }
   0x7   :  { %s141_s13 = smov 30   ;;  %s142_s14 = smov 24   ;;  %v113_v13 = vld [vmem:[%s207_s0 + $0x3] sm:$0x1]   ;;  %v114_v14 = vld [vmem:[%s207_s0 + $0x2] sm:$0x1]  }
   0x8   :  { %s143_s19 = smov 18   ;;  %s144_s20 = smov 12   ;;  %v115_v15 = vld [vmem:[%s207_s0 + $0x1] sm:$0x1]   ;;  %vm27_vm4 = vcmask 638528   ;;  %vm33_vm5 = vcmask 589328  }
   0x9   :  { %s145_s0 = smov 6   ;;  %vm39_vm6 = vcmask 540128   ;;  %vm45_vm7 = vcmask 490928   ;;  %vm51_vm8 = vcmask 441728   ;;  %vm57_vm9 = vcmask 392528  }
   0xa   :  { %31 = vrot.lane.b32.xlu0 %v105_v4, %s135_s24  ;;  %37 = vrot.lane.b32.xlu1 %v106_v5, %s136_s25  ;;  %vm63_vm10 = vcmask 343328   ;;  %vm69_vm11 = vcmask 294128   ;;  %vm75_vm12 = vcmask 244928   ;;  %vm81_vm13 = vcmask 195728  }
   0xb   :  { %vm87_vm14 = vcmask 146528   ;;  %vm93_vm15 = vcmask 97328  }
   0xe   :  { %43 = vrot.lane.b32.xlu0 %v107_v7, %s137_s30  ;;  %49 = vrot.lane.b32.xlu1 %v108_v8, %s138_s2 }
  0x12   :  { %55 = vrot.lane.b32.xlu0 %v109_v9, %s139_s7  ;;  %61 = vrot.lane.b32.xlu1 %v110_v10, %s140_s8 }
  0x16   :  { %67 = vrot.lane.b32.xlu0 %v111_v11, %s141_s13  ;;  %73 = vrot.lane.b32.xlu1 %v112_v12, %s142_s14 }
  0x1a   :  { %79 = vrot.lane.b32.xlu0 %v113_v13, %s143_s19  ;;  %85 = vrot.lane.b32.xlu1 %v114_v14, %s144_s20 }
  0x1e   :  { %91 = vrot.lane.b32.xlu0 %v115_v15, %s145_s0 }
  0x74   :  { %v8_v16 = vpop.permute.xlu0 %7   ;;  %v20_v17 = vpop.permute.xlu1 %19  }
  0x75   :  { %10 = vst.msk [vmem:[#allocation0] sm:$0x1] %vm9_vm1, %v8_v16  }
  0x78   :  { %v14_v18 = vpop.permute.xlu0 %13   ;;  %v26_v19 = vpop.permute.xlu1 %25  }
  0x79   :  { %16 = vst.msk [vmem:[#allocation0] sm:$0x1] %vm15_vm2, %v14_v18  }
  0x7a   :  { %22 = vst.msk [vmem:[#allocation0] sm:$0x1] %vm21_vm3, %v20_v17  }
  0x7b   :  { %28 = vst.msk [vmem:[#allocation0] sm:$0x1] %vm27_vm4, %v26_v19  }
  0x7c   :  { %v32_v20 = vpop.permute.xlu0 %31   ;;  %v38_v21 = vpop.permute.xlu1 %37  }
  0x7d   :  { %34 = vst.msk [vmem:[#allocation0] sm:$0x1] %vm33_vm5, %v32_v20  }
  0x7e   :  { %40 = vst.msk [vmem:[#allocation0] sm:$0x1] %vm39_vm6, %v38_v21  }
  0x80   :  { %v44_v22 = vpop.permute.xlu0 %43   ;;  %v50_v23 = vpop.permute.xlu1 %49  }
  0x81   :  { %46 = vst.msk [vmem:[#allocation0] sm:$0x1] %vm45_vm7, %v44_v22  }
  0x82   :  { %52 = vst.msk [vmem:[#allocation0] sm:$0x1] %vm51_vm8, %v50_v23  }
  0x84   :  { %v56_v24 = vpop.permute.xlu0 %55   ;;  %v62_v25 = vpop.permute.xlu1 %61  }
  0x85   :  { %58 = vst.msk [vmem:[#allocation0] sm:$0x1] %vm57_vm9, %v56_v24  }
  0x86   :  { %64 = vst.msk [vmem:[#allocation0] sm:$0x1] %vm63_vm10, %v62_v25  }
  0x88   :  { %v68_v26 = vpop.permute.xlu0 %67   ;;  %v74_v27 = vpop.permute.xlu1 %73  }
  0x89   :  { %70 = vst.msk [vmem:[#allocation0] sm:$0x1] %vm69_vm11, %v68_v26  }
  0x8a   :  { %76 = vst.msk [vmem:[#allocation0] sm:$0x1] %vm75_vm12, %v74_v27  }
  0x8c   :  { %v80_v28 = vpop.permute.xlu0 %79   ;;  %v86_v29 = vpop.permute.xlu1 %85  }
  0x8d   :  { %82 = vst.msk [vmem:[#allocation0] sm:$0x1] %vm81_vm13, %v80_v28  }
  0x8e   :  { %88 = vst.msk [vmem:[#allocation0] sm:$0x1] %vm87_vm14, %v86_v29  }
  0x90   :  { %v92_v30 = vpop.permute.xlu0 %91  }
  0x91   :  { %94 = vst.msk [vmem:[#allocation0] sm:$0x1] %vm93_vm15, %v92_v30  }
  0x98   :  { %v98_v31 = vld [vmem:[#allocation0] sm:$0x1] }
  0x99   :  { %100 = vst [vmem:[%s208_s1] sm:$0x1] %v98_v31 }

// kernel: torch_test_forward.1
= control target key start
LH: loop header
LB: loop body
LE: loop exit
PB: predicated region body
PF: predicated region fallthrough
CT: control target
= control target key end

     0   :  { %vm213_vm0 = vcmask 1045504   ;;  %vm206_vm1 = vcmask 359424   ;;  %s2762_s0 = inlined_call_operand.vmem [shape: f32[32,300], index: 0, kind: input, shape index: {}]   ;;  %s2763_s1 = inlined_call_operand.vmem [shape: bf16[300,96], index: 1, kind: input, shape index: {}]   ;;  %s2764_s2 = inlined_call_operand.vmem [shape: f32[96,6], index: 2, kind: input, shape index: {}]   ;;  %s2765_s3 = inlined_call_operand.vmem [shape: f32[6,96], index: 3, kind: input, shape index: {}]   ;;  %s2766_s4 = inlined_call_operand.vmem [shape: f32[1,96], index: 4, kind: input, shape index: {}]   ;;  %s2767_s5 = inlined_call_operand.vmem [shape: f32[1,96], index: 5, kind: input, shape index: {}]   ;;  %s2768_s6 = inlined_call_operand.vmem [shape: f32[16,32], index: 6, kind: input, shape index: {}]   ;;  %s2769_s7 = inlined_call_operand.vmem [shape: bf16[8,96,10], index: 7, kind: input, shape index: {}]   ;;  %s2770_s8 = inlined_call_operand.vmem [shape: f32[1,10], index: 8, kind: input, shape index: {}]   ;;  %s2771_s9 = inlined_call_operand.vmem [shape: s32[2,1], index: 9, kind: input, shape index: {}]   ;;  %s2772_s10 = inlined_call_operand.hbm [shape: f32[1,1], index: 10, kind: output, shape index: {}]  }
   0x1   :  { %v2173_v0 = vld [vmem:[%s2763_s1 + $0x40] sm:$0xff]   ;;  %v2175_v2 = vld [vmem:[%s2763_s1 + $0x48] sm:$0xff]   ;;  %v2177_v4 = vld [vmem:[%s2763_s1 + $0x50] sm:$0xff]  }
   0x2   :  { %v2174_v1 = vld [vmem:[%s2763_s1] sm:$0xff]   ;;  %1783 = vmatprep.subr.bf16.mxu0 %v2173_v0  ;;  %v2176_v3 = vld [vmem:[%s2763_s1 + $0x8] sm:$0xff]   ;;  %v2178_v5 = vld [vmem:[%s2763_s1 + $0x10] sm:$0xff]  }
   0x3   :  { %1784 = vmatpush3.bf16.msra.mxu0 %v2174_v1  ;;  %v2179_v6 = vld [vmem:[%s2763_s1 + $0x58] sm:$0xff]   ;;  %v2181_v8 = vld [vmem:[%s2763_s1 + $0x60] sm:$0xff]   ;;  %v2188_v11 = vld [vmem:[%s2763_s1 + $0x88] sm:$0xff]  }
   0x4   :  { %1785 = vmatprep.subr.bf16.mxu0 %v2175_v2  ;;  %v2180_v7 = vld [vmem:[%s2763_s1 + $0x18] sm:$0xff]   ;;  %v2185_v9 = vld [vmem:[%s2763_s1 + $0x80] sm:$0xff]   ;;  %v2183_v12 = vld [vmem:[%s2763_s1 + $0x68] sm:$0xff]  }
   0x5   :  { %v2182_v10 = vld [vmem:[%s2763_s1 + $0x20] sm:$0xff]   ;;  %1908 = vmatprep.subr.bf16.mxu1 %v2185_v9  ;;  %v2191_v13 = vld [vmem:[%s2763_s1 + $0x90] sm:$0x3f]   ;;  %v2184_v14 = vld [vmem:[%s2763_s1 + $0x28] sm:$0xff]  }
   0x6   :  { %1909 = vmatpush3.bf16.msra.mxu1 %v2185_v9  ;;  %v38_v15 = vld [vmem:[%s2762_s0 + $0x8] sm:$0xff]  ;;  %v41_v16 = vld [vmem:[%s2762_s0 + $0x20] sm:$0xff]  ;;  %v2186_v17 = vld [vmem:[%s2763_s1 + $0x70] sm:$0xff]   ;;  %v215_v19 = vsel %vm213_vm0, %v2191_v13, 0 }
   0x7   :  { %1786 = vmatpush3.bf16.msra.mxu0 %v2176_v3  ;;  %1910 = vmatprep.subr.bf16.mxu1 %v2188_v11  ;;  %v50_v18 = vpack.c.bf16 %v41_v16, %v38_v15  ;;  %v39_v20 = vld [vmem:[%s2762_s0 + $0x10] sm:$0xff]  ;;  %v42_v21 = vld [vmem:[%s2762_s0 + $0x28] sm:$0xff]  ;;  %v45_v23 = vld [vmem:[%s2762_s0 + $0x40] sm:$0xff] }
   0x8   :  { %1787 = vmatprep.subr.bf16.mxu0 %v2177_v4  ;;  %v51_v22 = vpack.c.bf16 %v42_v21, %v39_v20  ;;  %v48_v24 = vld [vmem:[%s2762_s0 + $0x58] sm:$0xff]  ;;  %v2187_v25 = vld [vmem:[%s2763_s1 + $0x30] sm:$0xff]   ;;  %v37_v29 = vld [vmem:[%s2762_s0] sm:$0xff] }
   0x9   :  { %v2189_v26 = vld [vmem:[%s2763_s1 + $0x78] sm:$0xff]   ;;  %249 = vmatprep.mubr.bf16.mxu0 %v50_v18  ;;  %v54_v27 = vpack.c.bf16 %v48_v24, %v45_v23  ;;  %v47_v32 = vld [vmem:[%s2762_s0 + $0x50] sm:$0xff]  ;;  %v46_v36 = vld [vmem:[%s2762_s0 + $0x48] sm:$0xff] }
   0xa   :  { %1911 = vmatpush3.bf16.msra.mxu1 %v2188_v11  ;;  %1914 = vmatprep.mubr.msk.bf16.mxu1 %vm206_vm1, %v51_v22  ;;  %v2190_v28 = vld [vmem:[%s2763_s1 + $0x38] sm:$0xff]   ;;  %v43_v35 = vld [vmem:[%s2762_s0 + $0x30] sm:$0xff] }
   0xb   :  { %1788 = vmatpush3.bf16.msra.mxu0 %v2178_v5  ;;  %2165 = vmatprep.subr.msk.bf16.mxu1 %vm213_vm0, %v2191_v13  ;;  %v40_v30 = vld [vmem:[%s2762_s0 + $0x18] sm:$0xff]  ;;  %v52_v37 = vpack.c.bf16 %v46_v36, %v43_v35 }
   0xc   :  { %1789 = vmatprep.subr.bf16.mxu0 %v2179_v6  ;;  %v44_v31 = vld [vmem:[%s2762_s0 + $0x38] sm:$0xff]  ;;  %v49_v33 = vpack.c.bf16 %v40_v30, %v37_v29 }
   0xd   :  { %v53_v34 = vpack.c.bf16 %v47_v32, %v44_v31 }
   0xe   :  { %1913 = vmatpush3.bf16.msra.mxu1 %v215_v19 }
   0xf   :  { %1790 = vmatpush3.bf16.msra.mxu0 %v2180_v7 }
  0x10   :  { %1791 = vmatprep.subr.bf16.mxu0 %v2181_v8 }
  0x11   :  { %1915 = vmatmul.mubr.msk.bf16.vlgmr.msra.gmra.mrb[0].mxu1 %vm206_vm1, %v54_v27 }
  0x13   :  { %1792 = vmatpush3.bf16.msra.mxu0 %v2182_v10 }
  0x14   :  { %1793 = vmatprep.subr.bf16.mxu0 %v2183_v12 }
  0x17   :  { %1794 = vmatpush3.bf16.msra.mxu0 %v2184_v14 }
  0x18   :  { %1795 = vmatprep.subr.bf16.mxu0 %v2186_v17 }
  0x1b   :  { %1796 = vmatpush3.bf16.msra.mxu0 %v2187_v25 }
  0x1c   :  { %1797 = vmatprep.subr.bf16.mxu0 %v2189_v26 }
  0x1f   :  { %1798 = vmatpush3.bf16.msra.mxu0 %v2190_v28 }
  0x22   :  { %250 = vmatmul.mubr.bf16.vlgmr.msra.gmra.mrb[0].mxu0 %v49_v33 }
  0x23   :  { %257 = vmatprep.mubr.bf16.mxu0 %v53_v34 }
  0x2a   :  { %258 = vmatmul.mubr.bf16.gmra.mrb[4].mxu0 %v52_v37 }
  0x2b   :  { %15 = vsyncpa [#allocation3], 0  ;;  %v329_v38 = vld [vmem:[%s2764_s2] sm:$0xff]  ;;  %v330_v39 = vld [vmem:[%s2764_s2 + $0x8] sm:$0xff]  ;;  %v2286_v41 = vmov 0.0|0.0   ;;  %vm2287_vm2 = vmmov 0   ;;  %v493_v31 = vlaneseq }
  0x2c   :  { %v2122_v40 = vpack.c.bf16 %v330_v39, %v329_v38  ;;  %2121 = vmatprep.subr.bf16.mxu1 %v2286_v41  ;;  %2139 = vmatprep.subr.bf16.mxu0 %v2286_v41  ;;  %v331_v42 = vld [vmem:[%s2764_s2 + $0x10] sm:$0xff]  ;;  %v332_v43 = vld [vmem:[%s2764_s2 + $0x18] sm:$0xff]  ;;  %v333_v45 = vld [vmem:[%s2764_s2 + $0x20] sm:$0xff]  ;;  %v2288_v57 = vmov 0.0   ;;  %vm315_vm3 = vcmask 785408   ;;  %vm416_vm4 = vcmask 48128  }
  0x2d   :  { %v2125_v44 = vpack.c.bf16 %v332_v43, %v331_v42  ;;  %v334_v46 = vld [vmem:[%s2764_s2 + $0x28] sm:$0xff]  ;;  %v335_v48 = vld [vmem:[%s2764_s2 + $0x30] sm:$0xff]  ;;  %v336_v49 = vld [vmem:[%s2764_s2 + $0x38] sm:$0xff]  ;;  %1942 = vmatprep.mubr.msk.f32.mxu1 %vm2287_vm2, %v2288_v57  ;;  %1974 = vmatprep.mubr.msk.f32.mxu0 %vm2287_vm2, %v2288_v57  ;;  %v494_v32 = vshrl.u32 %v493_v31, 7  ;;  %vm714_vm5 = vcmask 261120   ;;  %vm1555_vm6 = vcmask 74752  }
  0x2e   :  { %2123 = vmatpush3.bf16.msra.mxu1 %v2122_v40  ;;  %2141 = vmatpush3.bf16.msra.mxu0 %v2122_v40  ;;  %v2128_v47 = vpack.c.bf16 %v334_v46, %v333_v45  ;;  %v2131_v50 = vpack.c.bf16 %v336_v49, %v335_v48  ;;  %v337_v51 = vld [vmem:[%s2764_s2 + $0x40] sm:$0xff]  ;;  %v338_v52 = vld [vmem:[%s2764_s2 + $0x48] sm:$0xff]  ;;  %v339_v54 = vld [vmem:[%s2764_s2 + $0x50] sm:$0xff]  ;;  %vm1582_vm8 = vcmask 1041408   ;;  %vm1591_vm9 = vcmask 0  }
  0x2f   :  { %2124 = vmatprep.subr.bf16.mxu1 %v2286_v41  ;;  %2142 = vmatprep.subr.bf16.mxu0 %v2286_v41  ;;  %v2134_v53 = vpack.c.bf16 %v338_v52, %v337_v51  ;;  %v340_v55 = vld [vmem:[%s2764_s2 + $0x58] sm:$0xff]  ;;  %v415_v27 = vld [vmem:[%s2765_s3] sm:$0x3f]  ;;  %v495_v33 = vsub.s32 0, %v494_v32 }
  0x30   :  { %v2137_v56 = vpack.c.bf16 %v340_v55, %v339_v54 }
  0x32   :  { %2126 = vmatpush3.bf16.msra.mxu1 %v2125_v44  ;;  %2144 = vmatpush3.bf16.msra.mxu0 %v2125_v44 }
  0x33   :  { %2127 = vmatprep.subr.bf16.mxu1 %v2286_v41  ;;  %2145 = vmatprep.subr.bf16.mxu0 %v2286_v41 }
  0x36   :  { %2129 = vmatpush3.bf16.msra.mxu1 %v2128_v47  ;;  %2147 = vmatpush3.bf16.msra.mxu0 %v2128_v47 }
  0x37   :  { %2130 = vmatprep.subr.bf16.mxu1 %v2286_v41  ;;  %2148 = vmatprep.subr.bf16.mxu0 %v2286_v41 }
  0x3a   :  { %2132 = vmatpush3.bf16.msra.mxu1 %v2131_v50  ;;  %2150 = vmatpush3.bf16.msra.mxu0 %v2131_v50 }
  0x3b   :  { %2133 = vmatprep.subr.bf16.mxu1 %v2286_v41  ;;  %2151 = vmatprep.subr.bf16.mxu0 %v2286_v41 }
  0x3e   :  { %2135 = vmatpush3.bf16.msra.mxu1 %v2134_v53  ;;  %2153 = vmatpush3.bf16.msra.mxu0 %v2134_v53 }
  0x3f   :  { %2136 = vmatprep.subr.bf16.mxu1 %v2286_v41  ;;  %2154 = vmatprep.subr.bf16.mxu0 %v2286_v41 }
  0x42   :  { %2138 = vmatpush3.bf16.msra.mxu1 %v2137_v56  ;;  %2156 = vmatpush3.bf16.msra.mxu0 %v2137_v56 }
  0x43   :  { %1945 = vmatprep.subr.mxu1 %v2288_v57  ;;  %2009 = vmatprep.subr.bf16.mxu0 %v2288_v57 }
  0xe4   :  { %v1916_v58 = vpop.f32.mrb[0].mxu1 }
  0xe5   :  { %v300_v59 = vpop.f32.mrb[1].mxu1 }
  0xe6   :  { %v1917_v60 = vpop.f32.mrb[2].mxu1 }
  0xe7   :  { %v303_v61 = vpop.f32.mrb[3].mxu1 }
  0xf5   :  { %v1799_v62 = vpop.f32.mrb[0].mxu0 }
  0xf6   :  { %v1800_v63 = vpop.f32.mrb[1].mxu0 }
  0xf7   :  { %v1801_v0 = vadd.f32 %v1800_v63, %v1799_v62  ;;  %v1802_v1 = vpop.f32.mrb[2].mxu0 }
  0xf8   :  { %v1803_v2 = vpop.f32.mrb[3].mxu0 }
  0xf9   :  { %v1804_v3 = vadd.f32 %v1803_v2, %v1802_v1  ;;  %v301_v4 = vadd.f32 %v1801_v0, %v300_v59  ;;  %v712_v0 = vld [vmem:[%s2768_s6] sm:$0xff]  ;;  %v2194_v2 = vld [vmem:[%s2769_s7 + $0x8] sm:$0xff]  }
  0xfa   :  { %v2192_v1 = vld [vmem:[%s2769_s7] sm:$0xff]  }
  0xfb   :  { %v304_v5 = vadd.f32 %v1804_v3, %v303_v61  ;;  %v316_v12 = vsel %vm315_vm3, %v301_v4, 0.0  ;;  %v2196_v3 = vld [vmem:[%s2769_s7 + $0x10] sm:$0xff]  }
  0xfd   :  { %v1805_v6 = vpop.f32.mrb[4].mxu0  ;;  %v317_v8 = vsel %vm315_vm3, %v304_v5, 0.0 }
  0xfe   :  { %v1806_v7 = vpop.f32.mrb[5].mxu0  ;;  %v318_v15 = vadd.f32 %v317_v8, %v316_v12 }
  0xff   :  { %v1807_v9 = vadd.f32 %v1806_v7, %v1805_v6  ;;  %v1808_v10 = vpop.f32.mrb[6].mxu0  ;;  %v667_v6 = vld [vmem:[%s2766_s4] sm:$0x1] }
 0x100   :  { %v1809_v11 = vpop.f32.mrb[7].mxu0 }
 0x101   :  { %v309_v13 = vadd.f32 %v1916_v58, %v1807_v9  ;;  %v1810_v14 = vadd.f32 %v1809_v11, %v1808_v10  ;;  %v1634_v11 = vld [vmem:[%s2767_s5] ss:$0 sm:$0xff] }
 0x103   :  { %v319_v16 = vsel %vm315_vm3, %v309_v13, 0.0  ;;  %v312_v17 = vadd.f32 %v1917_v60, %v1810_v14 }
 0x104   :  { %v320_v18 = vadd.f32 %v319_v16, %v318_v15 }
 0x105   :  { %v321_v19 = vsel %vm315_vm3, %v312_v17, 0.0 }
 0x106   :  { %v322_v20 = vadd.f32 %v321_v19, %v320_v18 }
 0x108   :  { %v323_v21 = vrot.slane %v322_v20, 4 }
 0x10a   :  { %v324_v22 = vadd.f32 %v323_v21, %v322_v20 }
 0x10c   :  { %v325_v23 = vrot.slane %v324_v22, 2 }
 0x10e   :  { %v326_v24 = vadd.f32 %v325_v23, %v324_v22 }
 0x110   :  { %v327_v25 = vrot.slane %v326_v24, 1 }
 0x112   :  { %v328_v26 = vadd.f32 %v327_v25, %v326_v24 }
 0x114   :  { %1943 = vmatmul.mubr.msk.f32.vlgmr.msra.gmra.mrb[4].mxu1 %vm315_vm3, %v328_v26 }
 0x115   :  { %1946 = vmatpush3.msk.msra.mxu1 %vm213_vm0, %v415_v27  ;;  %1947 = vmatprep.mubr.msk.f32.mxu1 %vm2287_vm2, %v2288_v57 }
 0x116   :  { %1977 = vmatprep.subr.mxu1 %v2288_v57 }
 0x1e7   :  { %v410_v28 = vpop.f32.mrb[4].mxu1 }
 0x1e8   :  { %v414_v29 = vmul.f32 0.001953125, %v410_v28  ;;  %v1944_v30 = vpop.f32.mrb[5].mxu1 }
 0x1ea   :  { %1948 = vmatmul.mubr.msk.f32.vlgmr.msra.gmra.mrb[6].mxu1 %vm416_vm4, %v414_v29 }
 0x1eb   :  { %1978 = vmatpush3.msk.msra.mxu1 %vm213_vm0, %v415_v27  ;;  %1979 = vmatprep.mubr.msk.f32.mxu1 %vm2287_vm2, %v2288_v57 }
 0x2bd   :  { %v489_v34 = vpop.f32.mrb[6].mxu1 }
 0x2be   :  { %v496_v35 = vrot.slane %v489_v34, %v495_v33  ;;  %v1949_v36 = vpop.f32.mrb[7].mxu1 }
 0x2c0   :  { %v497_v37 = vsub.f32 %v301_v4, %v496_v35  ;;  %v498_v38 = vsub.f32 %v304_v5, %v496_v35  ;;  %v499_v39 = vsub.f32 %v309_v13, %v496_v35  ;;  %v500_v40 = vsub.f32 %v312_v17, %v496_v35  ;;  %v2198_v4 = vld [vmem:[%s2769_s7 + $0x18] sm:$0xff]   ;;  %v2200_v5 = vld [vmem:[%s2769_s7 + $0x20] sm:$0xff]  }
 0x2c2   :  { %v501_v41 = vmul.f32 %v497_v37, %v497_v37  ;;  %v502_v42 = vmul.f32 %v498_v38, %v498_v38  ;;  %v503_v43 = vmul.f32 %v499_v39, %v499_v39  ;;  %v504_v44 = vmul.f32 %v500_v40, %v500_v40 }
 0x2c4   :  { %v505_v45 = vsel %vm315_vm3, %v501_v41, 0.0  ;;  %v506_v46 = vsel %vm315_vm3, %v502_v42, 0.0  ;;  %v508_v48 = vsel %vm315_vm3, %v503_v43, 0.0  ;;  %v510_v50 = vsel %vm315_vm3, %v504_v44, 0.0  ;;  %v2195_v41 = vld [vmem:[%s2769_s7 + $0x38] sm:$0xff]   ;;  %v2197_v42 = vld [vmem:[%s2769_s7 + $0x40] sm:$0xff]  }
 0x2c5   :  { %v507_v47 = vadd.f32 %v506_v46, %v505_v45  ;;  %v2199_v43 = vld [vmem:[%s2769_s7 + $0x48] sm:$0xff]   ;;  %v2201_v44 = vld [vmem:[%s2769_s7 + $0x50] sm:$0xff]   ;;  %v2203_v46 = vld [vmem:[%s2769_s7 + $0x58] sm:$0xff]  }
 0x2c6   :  { %v2202_v45 = vld [vmem:[%s2769_s7 + $0x28] sm:$0xff]  }
 0x2c7   :  { %v509_v49 = vadd.f32 %v508_v48, %v507_v47 }
 0x2c9   :  { %v511_v51 = vadd.f32 %v510_v50, %v509_v49  ;;  %v2204_v49 = vld [vmem:[%s2769_s7 + $0x90] sm:$0xff]  }
 0x2cb   :  { %v512_v52 = vrot.slane %v511_v51, 4 }
 0x2cd   :  { %v513_v53 = vadd.f32 %v512_v52, %v511_v51  ;;  %v2205_v51 = vld [vmem:[%s2769_s7 + $0x60] sm:$0xff]  }
 0x2cf   :  { %v514_v54 = vrot.slane %v513_v53, 2 }
 0x2d1   :  { %v515_v55 = vadd.f32 %v514_v54, %v513_v53  ;;  %v2206_v53 = vld [vmem:[%s2769_s7 + $0x98] sm:$0xff]   ;;  %v2207_v54 = vld [vmem:[%s2769_s7 + $0x68] sm:$0xff]  }
 0x2d3   :  { %v516_v56 = vrot.slane %v515_v55, 1 }
 0x2d5   :  { %v517_v58 = vadd.f32 %v516_v56, %v515_v55  ;;  %v2208_v55 = vld [vmem:[%s2769_s7 + $0xa0] sm:$0xff]   ;;  %v2209_v56 = vld [vmem:[%s2769_s7 + $0x70] sm:$0xff]  }
 0x2d7   :  { %1975 = vmatmul.mubr.msk.f32.vlgmr.msra.gmra.mrb[8].mxu0 %vm315_vm3, %v517_v58  ;;  %v2210_v58 = vld [vmem:[%s2769_s7 + $0xa8] sm:$0xff]  }
 0x2d8   :  { %2021 = vmatprep.mubr.msk.bf16.mxu0 %vm2287_vm2, %v2288_v57  ;;  %2010 = vmatpush3.bf16.msra.mxu0 %v2192_v1 }
 0x2d9   :  { %2011 = vmatprep.subr.bf16.mxu0 %v2288_v57 }
 0x2dc   :  { %2012 = vmatpush3.bf16.msra.mxu0 %v2194_v2  ;;  %v2217_v2 = vld [vmem:[%s2769_s7 + $0xc0] sm:$0xff]  }
 0x2dd   :  { %2013 = vmatprep.subr.bf16.mxu0 %v2288_v57 }
 0x2e0   :  { %2014 = vmatpush3.bf16.msra.mxu0 %v2196_v3 }
 0x2e1   :  { %2015 = vmatprep.subr.bf16.mxu0 %v2288_v57 }
 0x2e4   :  { %2016 = vmatpush3.bf16.msra.mxu0 %v2198_v4  ;;  %v2218_v4 = vld [vmem:[%s2769_s7 + $0xf8] sm:$0xff]  }
 0x2e5   :  { %2017 = vmatprep.subr.bf16.mxu0 %v2288_v57 }
 0x2e8   :  { %2018 = vmatpush3.bf16.msra.mxu0 %v2200_v5  ;;  %v2219_v5 = vld [vmem:[%s2769_s7 + $0xc8] sm:$0xff]  }
 0x2e9   :  { %2019 = vmatprep.subr.bf16.mxu0 %v2288_v57 }
 0x2ec   :  { %2020 = vmatpush3.bf16.msra.mxu0 %v2202_v45 }
 0x2ed   :  { %2041 = vmatprep.subr.bf16.mxu0 %v2288_v57 }
 0x3aa   :  { %v587_v59 = vpop.f32.mrb[8].mxu0 }
 0x3ab   :  { %v591_v60 = vmul.f32 0.001953125, %v587_v59  ;;  %v1976_v61 = vpop.f32.mrb[9].mxu0  ;;  %v2211_v59 = vld [vmem:[%s2769_s7 + $0x78] sm:$0xff]  }
 0x3ac   :  { %v2213_v61 = vld [vmem:[%s2769_s7 + $0x80] sm:$0xff]  }
 0x3ad   :  { %v592_v62 = vadd.f32 1e-05, %v591_v60  ;;  %v2212_v60 = vld [vmem:[%s2769_s7 + $0xb0] sm:$0xff]  }
 0x3af   :  { %2240 = vrsqrt.f32 %v592_v62  ;;  %v2214_v62 = vld [vmem:[%s2769_s7 + $0xb8] sm:$0xff]  }
 0x3b9   :  { %v2241_v63 = vpop.eup %2240 }
 0x3ba   :  { %1980 = vmatmul.mubr.msk.f32.vlgmr.msra.gmra.mrb[8].mxu1 %vm416_vm4, %v2241_v63  ;;  %v2215_v63 = vld [vmem:[%s2769_s7 + $0x88] sm:$0xff]  }
 0x3bb   :  { %1990 = vmatprep.mubr.msk.f32.mxu1 %vm714_vm5, %v712_v0  ;;  %v2216_v0 = vld [vmem:[%s2769_s7 + $0xf0] sm:$0xff]  }
 0x48d   :  { %v663_v7 = vpop.f32.mrb[8].mxu1 }
 0x48e   :  { %v668_v8 = vmul.f32 %v667_v6, %v663_v7  ;;  %v1981_v9 = vpop.f32.mrb[9].mxu1  ;;  %v2220_v6 = vld [vmem:[%s2769_s7 + $0x100] sm:$0xff]   ;;  %v2221_v7 = vld [vmem:[%s2769_s7 + $0xd0] sm:$0xff]  }
 0x48f   :  { %v2223_v9 = vld [vmem:[%s2769_s7 + $0xd8] sm:$0xff]  }
 0x490   :  { %v672_v10 = vrot.slane %v668_v8, %v495_v33  ;;  %v2222_v8 = vld [vmem:[%s2769_s7 + $0x108] sm:$0xff]  }
 0x492   :  { %v673_v12 = vmul.f32 %v672_v10, %v497_v37  ;;  %v674_v13 = vmul.f32 %v672_v10, %v498_v38  ;;  %v675_v14 = vmul.f32 %v672_v10, %v499_v39  ;;  %v676_v15 = vmul.f32 %v672_v10, %v500_v40  ;;  %v713_v39 = vld [vmem:[%s2768_s6 + $0x8] sm:$0xff]  ;;  %v2193_v40 = vld [vmem:[%s2769_s7 + $0x30] sm:$0xff]  }
 0x493   :  { %v2224_v10 = vld [vmem:[%s2769_s7 + $0x110] sm:$0xff]  }
 0x494   :  { %v684_v16 = vadd.f32 %v1634_v11, %v673_v12  ;;  %v685_v17 = vadd.f32 %v1634_v11, %v674_v13  ;;  %v686_v18 = vadd.f32 %v1634_v11, %v675_v14  ;;  %v687_v19 = vadd.f32 %v1634_v11, %v676_v15  ;;  %v2225_v11 = vld [vmem:[%s2769_s7 + $0xe0] sm:$0xff]   ;;  %v2226_v12 = vld [vmem:[%s2769_s7 + $0x118] sm:$0xff]   ;;  %v2227_v14 = vld [vmem:[%s2769_s7 + $0xe8] sm:$0xff]  }
 0x495   :  { %v2228_v15 = vld [vmem:[%s2769_s7 + $0x150] sm:$0xff]  }
 0x496   :  { %v1635_v20 = vmul.f32 -1.442695, %v684_v16  ;;  %v1636_v21 = vmul.f32 -1.442695, %v685_v17  ;;  %v1637_v22 = vmul.f32 -1.442695, %v686_v18 }
 0x497   :  { %v1638_v23 = vmul.f32 -1.442695, %v687_v19  ;;  %v2229_v17 = vld [vmem:[%s2769_s7 + $0x120] sm:$0xff]   ;;  %v2230_v18 = vld [vmem:[%s2769_s7 + $0x158] sm:$0xff]   ;;  %v2231_v19 = vld [vmem:[%s2769_s7 + $0x128] sm:$0xff]  }
 0x498   :  { %2242 = vpow2.f32 %v1635_v20  ;;  %v2232_v20 = vld [vmem:[%s2769_s7 + $0x160] sm:$0xff]  }
 0x499   :  { %2244 = vpow2.f32 %v1636_v21  ;;  %v2233_v21 = vld [vmem:[%s2769_s7 + $0x130] sm:$0xff]  }
 0x49a   :  { %2246 = vpow2.f32 %v1637_v22  ;;  %v2234_v22 = vld [vmem:[%s2769_s7 + $0x168] sm:$0xff]  }
 0x49b   :  { %2248 = vpow2.f32 %v1638_v23  ;;  %v2235_v23 = vld [vmem:[%s2769_s7 + $0x138] sm:$0xff]  }
 0x4a2   :  { %v2243_v24 = vpop.eup %2242 }
 0x4a3   :  { %v2245_v25 = vpop.eup %2244  ;;  %v700_v26 = vadd.f32 1.0, %v2243_v24  ;;  %v2236_v24 = vld [vmem:[%s2769_s7 + $0x170] sm:$0xff]  }
 0x4a4   :  { %v2247_v27 = vpop.eup %2246  ;;  %v701_v28 = vadd.f32 1.0, %v2245_v25  ;;  %v2237_v25 = vld [vmem:[%s2769_s7 + $0x140] sm:$0xff]  }
 0x4a5   :  { %v2249_v29 = vpop.eup %2248  ;;  %2250 = vrcp.f32 %v700_v26  ;;  %v702_v30 = vadd.f32 1.0, %v2247_v27  ;;  %v2238_v26 = vld [vmem:[%s2769_s7 + $0x178] sm:$0xff]   ;;  %v2239_v27 = vld [vmem:[%s2769_s7 + $0x148] sm:$0xff]  }
 0x4a6   :  { %2252 = vrcp.f32 %v701_v28  ;;  %v703_v32 = vadd.f32 1.0, %v2249_v29 }
 0x4a7   :  { %2254 = vrcp.f32 %v702_v30 }
 0x4a8   :  { %2256 = vrcp.f32 %v703_v32 }
 0x4af   :  { %v2251_v33 = vpop.eup %2250 }
 0x4b0   :  { %v2253_v34 = vpop.eup %2252 }
 0x4b1   :  { %v2255_v35 = vpop.eup %2254  ;;  %v2157_v36 = vpack.c.bf16 %v2253_v34, %v2251_v33 }
 0x4b2   :  { %v2257_v37 = vpop.eup %2256 }
 0x4b3   :  { %2158 = vmatprep.subr.bf16.mxu1 %v2157_v36  ;;  %v2161_v38 = vpack.c.bf16 %v2257_v37, %v2255_v35 }
 0x4b4   :  { %2160 = vmatpush3.bf16.msra.mxu1 %v2157_v36 }
 0x4b5   :  { %2162 = vmatprep.subr.bf16.mxu1 %v2161_v38 }
 0x4b8   :  { %2164 = vmatpush3.bf16.msra.mxu1 %v2161_v38 }
 0x4b9   :  { %1993 = vmatprep.subr.bf16.mxu1 %v2288_v57 }
 0x4bb   :  { %1991 = vmatmul.mubr.msk.f32.vlgmr.msra.gmra.mrb[10].mxu1 %vm714_vm5, %v713_v39 }
 0x4bc   :  { %1994 = vmatpush3.bf16.msra.mxu1 %v2193_v40  ;;  %2005 = vmatprep.mubr.msk.bf16.mxu1 %vm2287_vm2, %v2288_v57 }
 0x4bd   :  { %1995 = vmatprep.subr.bf16.mxu1 %v2288_v57 }
 0x4c0   :  { %1996 = vmatpush3.bf16.msra.mxu1 %v2195_v41 }
 0x4c1   :  { %1997 = vmatprep.subr.bf16.mxu1 %v2288_v57 }
 0x4c4   :  { %1998 = vmatpush3.bf16.msra.mxu1 %v2197_v42 }
 0x4c5   :  { %1999 = vmatprep.subr.bf16.mxu1 %v2288_v57 }
 0x4c8   :  { %2000 = vmatpush3.bf16.msra.mxu1 %v2199_v43 }
 0x4c9   :  { %2001 = vmatprep.subr.bf16.mxu1 %v2288_v57 }
 0x4cc   :  { %2002 = vmatpush3.bf16.msra.mxu1 %v2201_v44 }
 0x4cd   :  { %2003 = vmatprep.subr.bf16.mxu1 %v2288_v57 }
 0x4d0   :  { %2004 = vmatpush3.bf16.msra.mxu1 %v2203_v46 }
 0x4d1   :  { %2025 = vmatprep.subr.bf16.mxu1 %v2288_v57 }
 0x58e   :  { %v2573_v47 = vpop.f32.mrb[10].mxu1 }
 0x58f   :  { %v787_v48 = vpop.f32.mrb[11].mxu1  ;;  %v1170_v13 = vpack.c.bf16 %v2573_v47, %v2573_v47 }
 0x590   :  { %v796_v50 = vpack.c.bf16 %v787_v48, %v787_v48 }
 0x591   :  { %v1278_v16 = vrot.slane %v1170_v13, 1  ;;  %v1466_v28 = vrot.slane %v1170_v13, 3  ;;  %v1372_v29 = vrot.slane %v1170_v13, 2 }
 0x592   :  { %v823_v52 = vrot.slane %v796_v50, 1  ;;  %2022 = vmatmul.mubr.msk.bf16.vlgmr.msra.gmra.mrb[12].mxu0 %vm315_vm3, %v796_v50  ;;  %v1089_v1 = vrot.slane %v796_v50, 3  ;;  %v995_v3 = vrot.slane %v796_v50, 2 }
 0x593   :  { %2042 = vmatpush3.bf16.msra.mxu0 %v2204_v49  ;;  %2053 = vmatprep.mubr.msk.bf16.mxu0 %vm2287_vm2, %v2288_v57 }
 0x594   :  { %2006 = vmatmul.mubr.msk.bf16.vlgmr.msra.gmra.mrb[12].mxu1 %vm315_vm3, %v823_v52  ;;  %2043 = vmatprep.subr.bf16.mxu0 %v2288_v57 }
 0x595   :  { %2026 = vmatpush3.bf16.msra.mxu1 %v2205_v51  ;;  %2037 = vmatprep.mubr.msk.bf16.mxu1 %vm2287_vm2, %v2288_v57 }
 0x596   :  { %2027 = vmatprep.subr.bf16.mxu1 %v2288_v57 }
 0x597   :  { %2044 = vmatpush3.bf16.msra.mxu0 %v2206_v53 }
 0x598   :  { %2045 = vmatprep.subr.bf16.mxu0 %v2288_v57 }
 0x599   :  { %2028 = vmatpush3.bf16.msra.mxu1 %v2207_v54 }
 0x59a   :  { %2029 = vmatprep.subr.bf16.mxu1 %v2288_v57 }
 0x59b   :  { %2046 = vmatpush3.bf16.msra.mxu0 %v2208_v55 }
 0x59c   :  { %2047 = vmatprep.subr.bf16.mxu0 %v2288_v57 }
 0x59d   :  { %2030 = vmatpush3.bf16.msra.mxu1 %v2209_v56 }
 0x59e   :  { %2031 = vmatprep.subr.bf16.mxu1 %v2288_v57 }
 0x59f   :  { %2048 = vmatpush3.bf16.msra.mxu0 %v2210_v58 }
 0x5a0   :  { %2049 = vmatprep.subr.bf16.mxu0 %v2288_v57 }
 0x5a1   :  { %2032 = vmatpush3.bf16.msra.mxu1 %v2211_v59 }
 0x5a2   :  { %2033 = vmatprep.subr.bf16.mxu1 %v2288_v57 }
 0x5a3   :  { %2050 = vmatpush3.bf16.msra.mxu0 %v2212_v60 }
 0x5a4   :  { %2051 = vmatprep.subr.bf16.mxu0 %v2288_v57 }
 0x5a5   :  { %2034 = vmatpush3.bf16.msra.mxu1 %v2213_v61 }
 0x5a6   :  { %2035 = vmatprep.subr.bf16.mxu1 %v2288_v57 }
 0x5a7   :  { %2052 = vmatpush3.bf16.msra.mxu0 %v2214_v62 }
 0x5a8   :  { %2073 = vmatprep.subr.bf16.mxu0 %v2288_v57 }
 0x5a9   :  { %2036 = vmatpush3.bf16.msra.mxu1 %v2215_v63 }
 0x5aa   :  { %2054 = vmatmul.mubr.msk.bf16.vlgmr.msra.gmra.mrb[16].mxu0 %vm315_vm3, %v1089_v1  ;;  %2057 = vmatprep.subr.bf16.mxu1 %v2288_v57 }
 0x5ab   :  { %2074 = vmatpush3.bf16.msra.mxu0 %v2216_v0  ;;  %2085 = vmatprep.mubr.msk.bf16.mxu0 %vm2287_vm2, %v2288_v57 }
 0x5ac   :  { %2038 = vmatmul.mubr.msk.bf16.vlgmr.msra.gmra.mrb[16].mxu1 %vm315_vm3, %v995_v3  ;;  %2075 = vmatprep.subr.bf16.mxu0 %v2288_v57 }
 0x5ad   :  { %2058 = vmatpush3.bf16.msra.mxu1 %v2217_v2  ;;  %2069 = vmatprep.mubr.msk.bf16.mxu1 %vm2287_vm2, %v2288_v57 }
 0x5ae   :  { %2059 = vmatprep.subr.bf16.mxu1 %v2288_v57 }
 0x5af   :  { %2076 = vmatpush3.bf16.msra.mxu0 %v2218_v4 }
 0x5b0   :  { %2077 = vmatprep.subr.bf16.mxu0 %v2288_v57 }
 0x5b1   :  { %2060 = vmatpush3.bf16.msra.mxu1 %v2219_v5  ;;  %v1781_v5 = vld [vmem:[%s2770_s8] ss:$0 sm:$0xff]  ;;  %s2290_s8 = smov [#allocation2]  }
 0x5b2   :  { %2061 = vmatprep.subr.bf16.mxu1 %v2288_v57 }
 0x5b3   :  { %2078 = vmatpush3.bf16.msra.mxu0 %v2220_v6 }
 0x5b4   :  { %2079 = vmatprep.subr.bf16.mxu0 %v2288_v57 }
 0x5b5   :  { %2062 = vmatpush3.bf16.msra.mxu1 %v2221_v7 }
 0x5b6   :  { %2063 = vmatprep.subr.bf16.mxu1 %v2288_v57 }
 0x5b7   :  { %2080 = vmatpush3.bf16.msra.mxu0 %v2222_v8 }
 0x5b8   :  { %2081 = vmatprep.subr.bf16.mxu0 %v2288_v57 }
 0x5b9   :  { %2064 = vmatpush3.bf16.msra.mxu1 %v2223_v9 }
 0x5ba   :  { %2065 = vmatprep.subr.bf16.mxu1 %v2288_v57 }
 0x5bb   :  { %2082 = vmatpush3.bf16.msra.mxu0 %v2224_v10  ;;  %v1570_v10 = vld [vmem:[%s2771_s9] sm:$0x3]  ;;  %s1599_s9 = sshll.u32 %s2290_s8, 4  ;;  %s1600_s9 = int_to_ptr.vmem [resolvable:$true] %s1599_s9 }
 0x5bc   :  { %2083 = vmatprep.subr.bf16.mxu0 %v2288_v57  ;;  %s2262_s16 = scalar_lea.vmem %s1600_s9, 16  ;;  %s2266_s3 = scalar_lea.vmem %s1600_s9, 32 }
 0x5bd   :  { %2066 = vmatpush3.bf16.msra.mxu1 %v2225_v11  ;;  %v2289_v11 = vmov 0   ;;  %p2263_p0 = scmp.ne.s32.totalorder %s1600_s9, %s2262_s16  ;;  %p2267_p1 = scmp.lt.s32.totalorder %s1600_s9, %s1600_s9 }
 0x5be   :  { %2067 = vmatprep.subr.bf16.mxu1 %v2288_v57  ;;  %2171 = vset.pattern.permute.xlu1 %v2289_v11  ;;  %p2268_p2 = scmp.lt.s32.totalorder %s2266_s3, %s2262_s16 }
 0x5bf   :  { %2084 = vmatpush3.bf16.msra.mxu0 %v2226_v12  ;;  %2172 = vset.pattern.permute.xlu0 %v2289_v11 }
 0x5c0   :  { %2105 = vmatprep.subr.bf16.mxu0 %v2288_v57  ;;  %1572 = vperm.xlu1 %2171, %v1570_v10   ;;  %p2269_p3 = por %p2268_p2, %p2267_p1 }
 0x5c1   :  { %2068 = vmatpush3.bf16.msra.mxu1 %v2227_v14 }
 0x5c2   :  { %2086 = vmatmul.mubr.msk.bf16.vlgmr.msra.gmra.mrb[20].mxu0 %vm315_vm3, %v1278_v16  ;;  %2089 = vmatprep.subr.bf16.mxu1 %v2288_v57  ;;  %p2270_p4 = pnand %p2269_p3, %p2263_p0 }
 0x5c3   :  { %2106 = vmatpush3.bf16.msra.mxu0 %v2228_v15  ;;  %2117 = vmatprep.mubr.msk.bf16.mxu0 %vm2287_vm2, %v2288_v57 }
 0x5c4   :  { %2070 = vmatmul.mubr.msk.bf16.vlgmr.msra.gmra.mrb[20].mxu1 %vm315_vm3, %v1170_v13  ;;  %2107 = vmatprep.subr.bf16.mxu0 %v2288_v57 }
 0x5c5   :  { %2090 = vmatpush3.bf16.msra.mxu1 %v2229_v17  ;;  %2101 = vmatprep.mubr.msk.bf16.mxu1 %vm2287_vm2, %v2288_v57 }
 0x5c6   :  { %2091 = vmatprep.subr.bf16.mxu1 %v2288_v57 }
 0x5c7   :  { %2108 = vmatpush3.bf16.msra.mxu0 %v2230_v18  ;;  %v1569_v18 = vand.u32 127, %v493_v31 }
 0x5c8   :  { %2109 = vmatprep.subr.bf16.mxu0 %v2288_v57 }
 0x5c9   :  { %2092 = vmatpush3.bf16.msra.mxu1 %v2231_v19 }
 0x5ca   :  { %2093 = vmatprep.subr.bf16.mxu1 %v2288_v57 }
 0x5cb   :  { %2110 = vmatpush3.bf16.msra.mxu0 %v2232_v20 }
 0x5cc   :  { %2111 = vmatprep.subr.bf16.mxu0 %v2288_v57 }
 0x5cd   :  { %2094 = vmatpush3.bf16.msra.mxu1 %v2233_v21 }
 0x5ce   :  { %2095 = vmatprep.subr.bf16.mxu1 %v2288_v57 }
 0x5cf   :  { %2112 = vmatpush3.bf16.msra.mxu0 %v2234_v22 }
 0x5d0   :  { %2113 = vmatprep.subr.bf16.mxu0 %v2288_v57 }
 0x5d1   :  { %2096 = vmatpush3.bf16.msra.mxu1 %v2235_v23 }
 0x5d2   :  { %2097 = vmatprep.subr.bf16.mxu1 %v2288_v57 }
 0x5d3   :  { %2114 = vmatpush3.bf16.msra.mxu0 %v2236_v24 }
 0x5d4   :  { %2115 = vmatprep.subr.bf16.mxu0 %v2288_v57 }
 0x5d5   :  { %2098 = vmatpush3.bf16.msra.mxu1 %v2237_v25 }
 0x5d6   :  { %2099 = vmatprep.subr.bf16.mxu1 %v2288_v57 }
 0x5d7   :  { %2116 = vmatpush3.bf16.msra.mxu0 %v2238_v26 }
 0x5d9   :  { %2100 = vmatpush3.bf16.msra.mxu1 %v2239_v27 }
 0x5da   :  { %2118 = vmatmul.mubr.msk.bf16.vlgmr.msra.gmra.mrb[24].mxu0 %vm315_vm3, %v1466_v28 }
 0x5dc   :  { %2102 = vmatmul.mubr.msk.bf16.vlgmr.msra.gmra.mrb[24].mxu1 %vm315_vm3, %v1372_v29 }
 0x63f   :  { %v1573_v19 = vpop.permute.xlu1 %1572 }
 0x640   :  { %vm1574_vm7 = vcmp.eq.s32.totalorder %v1569_v18, %v1573_v19 }
 0x641   :  { %v1782_v22 = vsel %vm1574_vm7, 1.0, %v2288_v57 }
 0x665   :  { %v976_v30 = vpop.f32.mrb[12].mxu0 }
 0x666   :  { %v2023_v32 = vpop.f32.mrb[13].mxu0 }
 0x667   :  { %v897_v33 = vpop.f32.mrb[12].mxu1  ;;  %v979_v34 = vpop.f32.mrb[14].mxu0 }
 0x668   :  { %v977_v35 = vadd.f32 %v976_v30, %v897_v33  ;;  %v2007_v36 = vpop.f32.mrb[13].mxu1  ;;  %v2024_v37 = vpop.f32.mrb[15].mxu0 }
 0x669   :  { %v900_v38 = vpop.f32.mrb[14].mxu1 }
 0x66a   :  { %v2008_v39 = vpop.f32.mrb[15].mxu1 }
 0x67d   :  { %v1163_v40 = vpop.f32.mrb[16].mxu0 }
 0x67e   :  { %v2055_v41 = vpop.f32.mrb[17].mxu0 }
 0x67f   :  { %v1069_v42 = vpop.f32.mrb[16].mxu1  ;;  %v1166_v43 = vpop.f32.mrb[18].mxu0 }
 0x680   :  { %v1075_v44 = vadd.f32 %v1069_v42, %v977_v35  ;;  %v2039_v45 = vpop.f32.mrb[17].mxu1  ;;  %v2056_v46 = vpop.f32.mrb[19].mxu0 }
 0x681   :  { %v1072_v47 = vpop.f32.mrb[18].mxu1 }
 0x682   :  { %v2040_v48 = vpop.f32.mrb[19].mxu1  ;;  %v1169_v49 = vadd.f32 %v1163_v40, %v1075_v44 }
 0x695   :  { %v1352_v50 = vpop.f32.mrb[20].mxu0 }
 0x696   :  { %v2087_v51 = vpop.f32.mrb[21].mxu0 }
 0x697   :  { %v1257_v52 = vpop.f32.mrb[20].mxu1  ;;  %v1355_v53 = vpop.f32.mrb[22].mxu0 }
 0x698   :  { %v1263_v54 = vadd.f32 %v1257_v52, %v1169_v49  ;;  %v2071_v55 = vpop.f32.mrb[21].mxu1  ;;  %v2088_v56 = vpop.f32.mrb[23].mxu0 }
 0x699   :  { %v1260_v58 = vpop.f32.mrb[22].mxu1 }
 0x69a   :  { %v2072_v59 = vpop.f32.mrb[23].mxu1  ;;  %v1358_v60 = vadd.f32 %v1352_v50, %v1263_v54 }
 0x6ad   :  { %v1540_v61 = vpop.f32.mrb[24].mxu0 }
 0x6ae   :  { %v2119_v62 = vpop.f32.mrb[25].mxu0 }
 0x6af   :  { %v1446_v63 = vpop.f32.mrb[24].mxu1  ;;  %v1543_v0 = vpop.f32.mrb[26].mxu0 }
 0x6b0   :  { %v1452_v1 = vadd.f32 %v1446_v63, %v1358_v60  ;;  %v2103_v2 = vpop.f32.mrb[25].mxu1  ;;  %v2120_v3 = vpop.f32.mrb[27].mxu0 }
 0x6b1   :  { %v1449_v4 = vpop.f32.mrb[26].mxu1 }
 0x6b2   :  { %v1546_v6 = vadd.f32 %v1540_v61, %v1452_v1  ;;  %v2104_v7 = vpop.f32.mrb[27].mxu1 }
 0x6b4   :  { %v1554_v8 = vadd.f32 %v1781_v5, %v1546_v6 }
 0x6b6   :  { %v1556_v9 = vsel %vm1555_vm6, %v1554_v8, -inf }
 0x6b7   :  { %1557 = vmax.xlane.f32.xlu0 %v1556_v9 }
 0x744   :  { %v1558_v12 = vpop.xlane.xlu0 %1557 }
 0x745   :  { %v1559_v13 = vsub.f32 %v1554_v8, %v1558_v12 }
 0x747   :  { %v1560_v14 = vmul.f32 1.442695, %v1559_v13 }
 0x749   :  { %2258 = vpow2.f32 %v1560_v14 }
 0x753   :  { %v2259_v15 = vpop.eup %2258 }
 0x754   :  { %v1562_v16 = vsel %vm1555_vm6, %v2259_v15, 0.0 }
 0x755   :  { %1563 = vadd.xlane.f32.xlu0 %v1562_v16 }
 0x7e2   :  { %v1564_v17 = vpop.xlane.xlu0 %1563 }
 0x7e3   :  { %2260 = vlog2.f32 %v1564_v17 }
 0x7ed   :  { %v2261_v20 = vpop.eup %2260 }
 0x7ee   :  { %v1566_v21 = vmul.f32 0.6931472, %v2261_v20 }
 0x7f0   :  { %v1567_v23 = vsub.f32 %v1559_v13, %v1566_v21 }
 0x7f2   :  { %v1577_v24 = vmul.f32 %v1782_v22, %v1567_v23 }
 0x7f4   :  { %v1578_v25 = vsel %vm1555_vm6, %v1577_v24, 0.0 }
 0x7f5   :  { %1579 = vadd.xlane.f32.xlu1 %v1578_v25 }
 0x882   :  { %v1580_v26 = vpop.xlane.xlu1 %1579 }
 0x883   :  { %v1581_v27 = vsub.f32 0.0, %v1580_v26 }
 0x885   :  { %v1583_v28 = vsel %vm1582_vm8, %v1581_v27, 0.0 }
 0x886   :  { %v1584_v29 = vrot.slane %v1583_v28, 4 }
 0x888   :  { %v1585_v30 = vadd.f32 %v1584_v29, %v1583_v28 }
 0x88a   :  { %v1586_v32 = vrot.slane %v1585_v30, 2 }
 0x88c   :  { %v1587_v33 = vadd.f32 %v1586_v32, %v1585_v30 }
 0x88e   :  { %v1588_v31 = vrot.slane %v1587_v33, 1 }
 0x890   :  { %v1589_v34 = vadd.f32 %v1588_v31, %v1587_v33 }
 0x892   :  { %v1590_v35 = vmul.f32 0.5, %v1589_v34 }
 0x894   :  { %1592 = vst.msk [vmem:[#allocation2] sm:$0x1] %vm1591_vm9, %v1590_v35 }
 0x895   :  { %2273 = shalt.err (!%p2270_p4)
}
 0x896   :  { %s2274_s18 = scalar_lea.hbm %s2772_s10, 16 }
 0x897   :  { %p2275_p5 = scmp.ne.s32.totalorder %s2772_s10, %s2274_s18  ;;  %p2278_p6 = scmp.lt.u32.totalorder %s2274_s18, %s2772_s10 }
 0x899   :  { %p2280_p7 = pnand %p2278_p6, %p2275_p5 }
 0x89b   :  { %2283 = shalt.err (!%p2280_p7)
}
 0x89c   :  { %1602 = dma.vmem_to_hbm [thread:$0]  %s1600_s9, 16, %s2772_s10, [#allocation3]  }
 0x89d   :  { %2284 = dma.done.wait [#allocation3], 16  }
 0x89e   :  { %2285 = vsyncadd [#allocation3], 4294967280 }
 0x89f   :  { %1606 = vsyncpa [#allocation3], 1 }

</bundles_post_ra>
